<compile_context>
chip_gen: v7x
topology: tpu7x:2x2x1
jax: 0.10.0
libtpu: 0.0.40
codegen_flags: <defaults>
</compile_context>

<pallas_src>
import math
import functools

import numpy as np
import jax
import jax.numpy as jnp
from jax.experimental import pallas as pl
from jax.experimental.pallas import tpu as pltpu

N_HEADS = 4
LN_EPS = 1e-5


# ----------------------------------------------------------------------------
# Kernel
# ----------------------------------------------------------------------------
def encoder_layer_kernel(x_ref, wqkv_ref, wfc_ref, w1_ref, vec_ref, const_ref,
                         out_ref, *, matmul_dtype):
    """Fully fused EncoderLayer forward for one sequence (one grid step)."""
    X = x_ref[0]                              # (N, D) float32
    N, D = X.shape
    H = N_HEADS
    dk = D // H
    n_blk = D // N                            # lane blocks of the torch permutation

    def mm(a, b):
        # MXU matmul with configurable operand dtype (bf16 on v5e/v6e/v7x),
        # always accumulating in f32.
        return jnp.dot(a.astype(matmul_dtype), b.astype(matmul_dtype),
                       preferred_element_type=jnp.float32)

    def mm_t(a, b):
        # a @ b^T without an explicit transpose (contract the last dims).
        return jax.lax.dot_general(a, b, (((1,), (1,)), ((), ())),
                                   preferred_element_type=jnp.float32)

    # Init-time constants, one packed DMA: [ SEL | MASK | REP ].
    consts = const_ref[...]
    SEL = consts[0:n_blk * N, 0:D]            # SEL[j*N+r, r*n_blk+j] = 1
    MASK = consts[0:H * N, D:2 * D]           # rows of head h keep only head-h lanes
    REP = consts[0:H * N, 2 * D:2 * D + N]    # replicate the N sequence rows per head

    # ---- fused QKV projection (1/sqrt(d_k) pre-folded into the Q columns) ----
    qkv = mm(X, wqkv_ref[...])                # (N, 3D) f32
    qkv_c = qkv.astype(matmul_dtype)          # cast once; every slice below reuses it

    # ---- head-batched scores: all H score blocks stacked along sublanes ----
    # Qwide[h*N+n, :] = Q[n, :] masked to head h's d_k lanes, so a single
    # dot_general against K produces the scores of every head on one
    # (H*N, N) tile -> one softmax chain instead of four.
    Qrep = mm(REP, qkv_c[:, 0:D])                         # (H*N, D)
    Qwide = (Qrep * MASK).astype(matmul_dtype)
    scores = mm_t(Qwide, qkv_c[:, D:2 * D])               # (H*N, N) f32, pre-scaled

    # ---- softmax (exact; approx reciprocal removed per review) ----
    m = jnp.max(scores, axis=-1, keepdims=True)
    e = jnp.exp(scores - m)
    attn = (e / jnp.sum(e, axis=-1, keepdims=True)).astype(matmul_dtype)

    # ---- per-head context + torch's transpose(1,2).reshape(-1, H*d_v) ----
    # blocks[j*N+r, n] = ctx_std[n, r*n_blk+j]  (ctx_std = heads side by side),
    # obtained purely with the init-time SEL constant (no iota / eye / reshape).
    blocks = jnp.zeros((n_blk * N, N), jnp.float32)
    for h in range(H):
        lo = h * dk
        ctx_h = mm(attn[h * N:(h + 1) * N, :],
                   qkv_c[:, 2 * D + lo:2 * D + lo + dk])          # (N, dk)
        blocks = blocks + mm_t(SEL[:, lo:lo + dk], ctx_h)         # (n_blk*N, N)

    # fc folded in block-by-block: attn_out = sum_j blocks_j @ Wfc_j.
    Wfc = wfc_ref[...]
    attn_out = jnp.zeros((N, D), jnp.float32)
    for j in range(n_blk):
        attn_out = attn_out + mm(blocks[j * N:(j + 1) * N, :],
                                 Wfc[j * N:(j + 1) * N, :])

    # ---- packed LayerNorm / bias vectors (single (8, D) input) ----
    vec = vec_ref[...]
    b1, g1, be1 = vec[0:1, :], vec[1:2, :], vec[2:3, :]
    g2, be2 = vec[3:4, :], vec[4:5, :]

    # ---- residual + LayerNorm1 ----
    y = attn_out + X
    mu = jnp.mean(y, axis=-1, keepdims=True)
    var = jnp.mean((y - mu) ** 2, axis=-1, keepdims=True)
    x1 = (y - mu) * jax.lax.rsqrt(var + LN_EPS) * g1 + be1

    # ---- l1 + residual + LayerNorm2 ----
    z = mm(x1, w1_ref[...]) + b1
    y2 = z + x1
    mu2 = jnp.mean(y2, axis=-1, keepdims=True)
    var2 = jnp.mean((y2 - mu2) ** 2, axis=-1, keepdims=True)
    out_ref[0] = (y2 - mu2) * jax.lax.rsqrt(var2 + LN_EPS) * g2 + be2


# ----------------------------------------------------------------------------
# One-time parameter preparation (runs at init, NOT per forward call)
# ----------------------------------------------------------------------------
def prepare_params(params, seq_len):
    D = params["wq_t"].shape[0]
    N = int(seq_len)
    H = N_HEADS
    assert D % H == 0, "input_dim must be divisible by n_heads"
    dk = D // H
    assert D % N == 0, "permutation-as-matmul requires (n_heads*d_v) % seq_len == 0"
    n_blk = D // N

    # (1) fold 1/sqrt(d_k) into W_Q and fuse W_Q|W_K|W_V -> one (D, 3D) weight.
    scale = 1.0 / math.sqrt(dk)
    wqkv = jnp.concatenate(
        [params["wq_t"] * scale, params["wk_t"], params["wv_t"]], axis=1)

    # (2) pack the five (1, D) vectors into one sublane-aligned (8, D) tile.
    vecs = np.zeros((8, D), np.float32)
    for i, name in enumerate(("b1", "g1", "be1", "g2", "be2")):
        vecs[i, :] = np.asarray(params[name]).reshape(D)

    # (3) trace-time constants: permutation selectors, head mask, head replicator.
    rows = max(n_blk * N, H * N)
    sel = np.zeros((rows, D), np.float32)
    for j in range(n_blk):
        for r in range(N):
            sel[j * N + r, r * n_blk + j] = 1.0
    mask = np.zeros((rows, D), np.float32)
    rep = np.zeros((rows, N), np.float32)
    for h in range(H):
        mask[h * N:(h + 1) * N, h * dk:(h + 1) * dk] = 1.0
        rep[h * N:(h + 1) * N, :] = np.eye(N, dtype=np.float32)
    consts = jnp.asarray(np.concatenate([sel, mask, rep], axis=1))  # (rows, 2D+N)

    return {
        "wqkv": wqkv,
        "wfc_t": params["wfc_t"],
        "w1_t": params["w1_t"],
        "vecs": jnp.asarray(vecs),
        "consts": consts,
        "seq_len": N,
    }


# ----------------------------------------------------------------------------
# Wrappers
# ----------------------------------------------------------------------------
def encoder_layer_batched(Xb, prep, *, matmul_dtype=jnp.bfloat16):
    """Apply the EncoderLayer independently to B sequences (grid over batch)."""
    B, N, D = Xb.shape
    assert N == prep["seq_len"], "prepare_params was built for a different seq_len"
    H, dk, n_blk = N_HEADS, D // N_HEADS, D // N

    kernel = functools.partial(encoder_layer_kernel, matmul_dtype=matmul_dtype)

    flops_seq = 2 * (N * D * 3 * D            # QKV projection
                     + (H * N) * N * D        # head replication
                     + (H * N) * D * N        # scores
                     + H * N * N * dk         # context
                     + H * (n_blk * N) * dk * N   # permutation selection
                     + n_blk * N * N * D      # fc
                     + N * D * D)             # l1
    cost = pl.CostEstimate(
        flops=int(B * flops_seq),
        transcendentals=int(B * (H * N * N + 2 * N)),
        bytes_accessed=int(4 * (B * 2 * N * D + D * 3 * D + 2 * D * D
                                + prep["vecs"].size + prep["consts"].size)),
    )

    return pl.pallas_call(
        kernel,
        out_shape=jax.ShapeDtypeStruct((B, N, D), jnp.float32),
        grid=(B,),
        in_specs=[
            pl.BlockSpec((1, N, D), lambda b: (b, 0, 0)),          # X: streamed per step
            pl.BlockSpec(prep["wqkv"].shape, lambda b: (0, 0)),    # weights/constants:
            pl.BlockSpec(prep["wfc_t"].shape, lambda b: (0, 0)),   #   constant index_map ->
            pl.BlockSpec(prep["w1_t"].shape, lambda b: (0, 0)),    #   VMEM-resident across
            pl.BlockSpec(prep["vecs"].shape, lambda b: (0, 0)),    #   grid steps (no re-DMA)
            pl.BlockSpec(prep["consts"].shape, lambda b: (0, 0)),
        ],
        out_specs=pl.BlockSpec((1, N, D), lambda b: (b, 0, 0)),
        compiler_params=pltpu.CompilerParams(
            dimension_semantics=("parallel",)),                    # megacore sharding on v7x
        cost_estimate=cost,
    )(Xb, prep["wqkv"], prep["wfc_t"], prep["w1_t"], prep["vecs"], prep["consts"])


def encoder_layer(X, prep, *, matmul_dtype=jnp.bfloat16):
    """Module-shaped entry point: a single (seq_len, input_dim) sequence."""
    return encoder_layer_batched(X[None, ...], prep, matmul_dtype=matmul_dtype)[0]


# ----------------------------------------------------------------------------
# Pure-JAX reference mirroring the PyTorch forward exactly
# ----------------------------------------------------------------------------
def reference_encoder_layer(X, params):
    N, D = X.shape
    dk = D // N_HEADS
    Q = (X @ params["wq_t"]).reshape(N, N_HEADS, dk).transpose(1, 0, 2)
    K = (X @ params["wk_t"]).reshape(N, N_HEADS, dk).transpose(1, 0, 2)
    V = (X @ params["wv_t"]).reshape(N, N_HEADS, dk).transpose(1, 0, 2)
    scores = jnp.einsum("hnd,hmd->hnm", Q, K) / np.sqrt(dk)
    attn = jax.nn.softmax(scores, axis=-1)
    context = jnp.einsum("hnm,hmd->hnd", attn, V)
    # Faithful replication of torch's context.transpose(1, 2).reshape(-1, H*d_v)
    # (it mixes sequence positions into the feature axis; kept as-is per spec).
    context = jnp.transpose(context, (0, 2, 1)).reshape(N, N_HEADS * dk)
    output = context @ params["wfc_t"]

    def ln(y, g, b):
        mu = y.mean(-1, keepdims=True)
        var = ((y - mu) ** 2).mean(-1, keepdims=True)
        return (y - mu) / jnp.sqrt(var + LN_EPS) * g + b

    X1 = ln(output + X, params["g1"], params["be1"])
    out = X1 @ params["w1_t"] + params["b1"]
    return ln(out + X1, params["g2"], params["be2"])


def make_params(key, D):
    ks = jax.random.split(key, 6)
    scale = 1.0 / math.sqrt(D)
    return {
        "wq_t": jax.random.uniform(ks[0], (D, D), jnp.float32, -scale, scale),
        "wk_t": jax.random.uniform(ks[1], (D, D), jnp.float32, -scale, scale),
        "wv_t": jax.random.uniform(ks[2], (D, D), jnp.float32, -scale, scale),
        "wfc_t": jax.random.uniform(ks[3], (D, D), jnp.float32, -scale, scale),
        "w1_t": jax.random.uniform(ks[4], (D, D), jnp.float32, -scale, scale),
        "b1": jax.random.uniform(ks[5], (1, D), jnp.float32, -scale, scale),
        "g1": jnp.ones((1, D), jnp.float32),
        "be1": jnp.zeros((1, D), jnp.float32),
        "g2": jnp.ones((1, D), jnp.float32),
        "be2": jnp.zeros((1, D), jnp.float32),
    }


if __name__ == "__main__":
    N, D, B = 8, 32, 4      # seq=8, input_dim=32 (n_heads=4, d_k=d_v=8), 4 sequences
    key = jax.random.PRNGKey(0)
    kx, kp = jax.random.split(key)
    Xb = jax.random.normal(kx, (B, N, D), dtype=jnp.float32)
    params = make_params(kp, D)
    prep = prepare_params(params, seq_len=N)        # once, at init time

    ref = jax.vmap(lambda x: reference_encoder_layer(x, params))(Xb)

    # (a) f32 MXU operands: tight check -- the kernel itself is now exact
    #     (approximate softmax reciprocal removed); bound left conservative for
    #     MXU f32 precision-mode differences across generations.
    out_f32 = jax.block_until_ready(
        encoder_layer_batched(Xb, prep, matmul_dtype=jnp.float32))
    np.testing.assert_allclose(np.asarray(out_f32), np.asarray(ref),
                               rtol=1e-3, atol=1e-3)

    # (b) default path: bf16 MXU operands (v5e/v6e/v7x native), f32 accumulation,
    #     f32 softmax / LayerNorm math.
    out_bf16 = jax.block_until_ready(encoder_layer_batched(Xb, prep))
    np.testing.assert_allclose(np.asarray(out_bf16), np.asarray(ref),
                               rtol=4e-2, atol=4e-2)

    # (c) single-sequence, module-shaped entry point.
    out_one = jax.block_until_ready(
        encoder_layer(Xb[0], prep, matmul_dtype=jnp.float32))
    np.testing.assert_allclose(np.asarray(out_one), np.asarray(ref[0]),
                               rtol=1e-3, atol=1e-3)

    print("KERNEL_OK")
</pallas_src>

<mosaic_0001>
module attributes {stable_mosaic.version = 11 : i64} {
  func.func @encoder_layer_kernel(%arg0: i32, %arg1: memref<1x8x32xf32, #tpu.memory_space<vmem>>, %arg2: memref<32x96xf32, #tpu.memory_space<vmem>>, %arg3: memref<32x32xf32, #tpu.memory_space<vmem>>, %arg4: memref<32x32xf32, #tpu.memory_space<vmem>>, %arg5: memref<8x32xf32, #tpu.memory_space<vmem>>, %arg6: memref<32x72xf32, #tpu.memory_space<vmem>>, %arg7: memref<1x8x32xf32, #tpu.memory_space<vmem>>) attributes {dimension_semantics = [#tpu.dimension_semantics<parallel>], iteration_bounds = array<i64: 4>, scalar_prefetch = 0 : i64, scratch_operands = 0 : i64, tpu.core_type = #tpu.core_type<tc>, window_params = [{transform_indices = @transform_0, window_bounds = array<i64: 1, 8, 32>}, {pipeline_mode = #tpu.pipeline_mode<synchronous>, transform_indices = @transform_1, window_bounds = array<i64: 32, 96>}, {pipeline_mode = #tpu.pipeline_mode<synchronous>, transform_indices = @transform_2, window_bounds = array<i64: 32, 32>}, {pipeline_mode = #tpu.pipeline_mode<synchronous>, transform_indices = @transform_3, window_bounds = array<i64: 32, 32>}, {pipeline_mode = #tpu.pipeline_mode<synchronous>, transform_indices = @transform_4, window_bounds = array<i64: 8, 32>}, {pipeline_mode = #tpu.pipeline_mode<synchronous>, transform_indices = @transform_5, window_bounds = array<i64: 32, 72>}, {transform_indices = @transform_6, window_bounds = array<i64: 1, 8, 32>}]} {
    %c0 = arith.constant 0 : index
    %c0_0 = arith.constant 0 : index
    %c0_1 = arith.constant 0 : index
    %0 = vector.load %arg1[%c0, %c0_0, %c0_1] : memref<1x8x32xf32, #tpu.memory_space<vmem>>, vector<1x8x32xf32>
    %1 = vector.shape_cast %0 : vector<1x8x32xf32> to vector<8x32xf32>
    %c0_2 = arith.constant 0 : index
    %c0_3 = arith.constant 0 : index
    %2 = vector.load %arg6[%c0_2, %c0_3] : memref<32x72xf32, #tpu.memory_space<vmem>>, vector<32x72xf32>
    %3 = vector.extract_strided_slice %2 {offsets = [0, 0], sizes = [32, 32], strides = [1, 1]} : vector<32x72xf32> to vector<32x32xf32>
    %4 = vector.extract_strided_slice %2 {offsets = [0, 32], sizes = [32, 32], strides = [1, 1]} : vector<32x72xf32> to vector<32x32xf32>
    %5 = vector.extract_strided_slice %2 {offsets = [0, 64], sizes = [32, 8], strides = [1, 1]} : vector<32x72xf32> to vector<32x8xf32>
    %c0_4 = arith.constant 0 : index
    %c0_5 = arith.constant 0 : index
    %6 = vector.load %arg2[%c0_4, %c0_5] : memref<32x96xf32, #tpu.memory_space<vmem>>, vector<32x96xf32>
    %cst = arith.constant dense<0.000000e+00> : vector<8x96xf32>
    %7 = tpu.matmul %1, %6, %cst {dimension_numbers = #tpu.dot_dimension_numbers<[1], [0], [0], [1], [0, 0, 1, 1], [], []>} : vector<8x32xf32>, vector<32x96xf32>, vector<8x96xf32> -> vector<8x96xf32>
    %8 = vector.extract_strided_slice %7 {offsets = [0, 0], sizes = [8, 32], strides = [1, 1]} : vector<8x96xf32> to vector<8x32xf32>
    %cst_6 = arith.constant dense<0.000000e+00> : vector<32x32xf32>
    %9 = tpu.matmul %5, %8, %cst_6 {dimension_numbers = #tpu.dot_dimension_numbers<[1], [0], [0], [1], [0, 0, 1, 1], [], []>} : vector<32x8xf32>, vector<8x32xf32>, vector<32x32xf32> -> vector<32x32xf32>
    %10 = arith.mulf %9, %4 : vector<32x32xf32>
    %11 = vector.extract_strided_slice %7 {offsets = [0, 32], sizes = [8, 32], strides = [1, 1]} : vector<8x96xf32> to vector<8x32xf32>
    %cst_7 = arith.constant dense<0.000000e+00> : vector<32x8xf32>
    %12 = tpu.matmul %10, %11, %cst_7 {dimension_numbers = #tpu.dot_dimension_numbers<[1], [1], [0], [0], [0, 0, 1, 0], [], []>} : vector<32x32xf32>, vector<8x32xf32>, vector<32x8xf32> -> vector<32x8xf32>
    %cst_8 = arith.constant dense<0xFF800000> : vector<32xf32>
    %13 = vector.multi_reduction <maximumf>, %12, %cst_8 [1] : vector<32x8xf32> to vector<32xf32>
    %14 = vector.shape_cast %13 : vector<32xf32> to vector<32x1xf32>
    %15 = vector.broadcast %14 : vector<32x1xf32> to vector<32x8xf32>
    %16 = arith.subf %12, %15 : vector<32x8xf32>
    %17 = math.exp %16 : vector<32x8xf32>
    %cst_9 = arith.constant dense<0.000000e+00> : vector<32xf32>
    %18 = vector.multi_reduction <add>, %17, %cst_9 [1] : vector<32x8xf32> to vector<32xf32>
    %19 = vector.shape_cast %18 : vector<32xf32> to vector<32x1xf32>
    %20 = vector.broadcast %19 : vector<32x1xf32> to vector<32x8xf32>
    %21 = arith.divf %17, %20 : vector<32x8xf32>
    %cst_10 = arith.constant 0.000000e+00 : f32
    %22 = vector.broadcast %cst_10 : f32 to vector<32x8xf32>
    %23 = vector.extract_strided_slice %21 {offsets = [0, 0], sizes = [8, 8], strides = [1, 1]} : vector<32x8xf32> to vector<8x8xf32>
    %24 = vector.extract_strided_slice %7 {offsets = [0, 64], sizes = [8, 8], strides = [1, 1]} : vector<8x96xf32> to vector<8x8xf32>
    %cst_11 = arith.constant dense<0.000000e+00> : vector<8x8xf32>
    %25 = tpu.matmul %23, %24, %cst_11 {dimension_numbers = #tpu.dot_dimension_numbers<[1], [0], [0], [1], [0, 0, 1, 1], [], []>} : vector<8x8xf32>, vector<8x8xf32>, vector<8x8xf32> -> vector<8x8xf32>
    %26 = vector.extract_strided_slice %3 {offsets = [0, 0], sizes = [32, 8], strides = [1, 1]} : vector<32x32xf32> to vector<32x8xf32>
    %cst_12 = arith.constant dense<0.000000e+00> : vector<32x8xf32>
    %27 = tpu.matmul %26, %25, %cst_12 {dimension_numbers = #tpu.dot_dimension_numbers<[1], [1], [0], [0], [0, 0, 1, 0], [], []>} : vector<32x8xf32>, vector<8x8xf32>, vector<32x8xf32> -> vector<32x8xf32>
    %28 = arith.addf %22, %27 : vector<32x8xf32>
    %29 = vector.extract_strided_slice %21 {offsets = [8, 0], sizes = [8, 8], strides = [1, 1]} : vector<32x8xf32> to vector<8x8xf32>
    %30 = vector.extract_strided_slice %7 {offsets = [0, 72], sizes = [8, 8], strides = [1, 1]} : vector<8x96xf32> to vector<8x8xf32>
    %cst_13 = arith.constant dense<0.000000e+00> : vector<8x8xf32>
    %31 = tpu.matmul %29, %30, %cst_13 {dimension_numbers = #tpu.dot_dimension_numbers<[1], [0], [0], [1], [0, 0, 1, 1], [], []>} : vector<8x8xf32>, vector<8x8xf32>, vector<8x8xf32> -> vector<8x8xf32>
    %32 = vector.extract_strided_slice %3 {offsets = [0, 8], sizes = [32, 8], strides = [1, 1]} : vector<32x32xf32> to vector<32x8xf32>
    %cst_14 = arith.constant dense<0.000000e+00> : vector<32x8xf32>
    %33 = tpu.matmul %32, %31, %cst_14 {dimension_numbers = #tpu.dot_dimension_numbers<[1], [1], [0], [0], [0, 0, 1, 0], [], []>} : vector<32x8xf32>, vector<8x8xf32>, vector<32x8xf32> -> vector<32x8xf32>
    %34 = arith.addf %28, %33 : vector<32x8xf32>
    %35 = vector.extract_strided_slice %21 {offsets = [16, 0], sizes = [8, 8], strides = [1, 1]} : vector<32x8xf32> to vector<8x8xf32>
    %36 = vector.extract_strided_slice %7 {offsets = [0, 80], sizes = [8, 8], strides = [1, 1]} : vector<8x96xf32> to vector<8x8xf32>
    %cst_15 = arith.constant dense<0.000000e+00> : vector<8x8xf32>
    %37 = tpu.matmul %35, %36, %cst_15 {dimension_numbers = #tpu.dot_dimension_numbers<[1], [0], [0], [1], [0, 0, 1, 1], [], []>} : vector<8x8xf32>, vector<8x8xf32>, vector<8x8xf32> -> vector<8x8xf32>
    %38 = vector.extract_strided_slice %3 {offsets = [0, 16], sizes = [32, 8], strides = [1, 1]} : vector<32x32xf32> to vector<32x8xf32>
    %cst_16 = arith.constant dense<0.000000e+00> : vector<32x8xf32>
    %39 = tpu.matmul %38, %37, %cst_16 {dimension_numbers = #tpu.dot_dimension_numbers<[1], [1], [0], [0], [0, 0, 1, 0], [], []>} : vector<32x8xf32>, vector<8x8xf32>, vector<32x8xf32> -> vector<32x8xf32>
    %40 = arith.addf %34, %39 : vector<32x8xf32>
    %41 = vector.extract_strided_slice %21 {offsets = [24, 0], sizes = [8, 8], strides = [1, 1]} : vector<32x8xf32> to vector<8x8xf32>
    %42 = vector.extract_strided_slice %7 {offsets = [0, 88], sizes = [8, 8], strides = [1, 1]} : vector<8x96xf32> to vector<8x8xf32>
    %cst_17 = arith.constant dense<0.000000e+00> : vector<8x8xf32>
    %43 = tpu.matmul %41, %42, %cst_17 {dimension_numbers = #tpu.dot_dimension_numbers<[1], [0], [0], [1], [0, 0, 1, 1], [], []>} : vector<8x8xf32>, vector<8x8xf32>, vector<8x8xf32> -> vector<8x8xf32>
    %44 = vector.extract_strided_slice %3 {offsets = [0, 24], sizes = [32, 8], strides = [1, 1]} : vector<32x32xf32> to vector<32x8xf32>
    %cst_18 = arith.constant dense<0.000000e+00> : vector<32x8xf32>
    %45 = tpu.matmul %44, %43, %cst_18 {dimension_numbers = #tpu.dot_dimension_numbers<[1], [1], [0], [0], [0, 0, 1, 0], [], []>} : vector<32x8xf32>, vector<8x8xf32>, vector<32x8xf32> -> vector<32x8xf32>
    %46 = arith.addf %40, %45 : vector<32x8xf32>
    %c0_19 = arith.constant 0 : index
    %c0_20 = arith.constant 0 : index
    %47 = vector.load %arg3[%c0_19, %c0_20] : memref<32x32xf32, #tpu.memory_space<vmem>>, vector<32x32xf32>
    %cst_21 = arith.constant 0.000000e+00 : f32
    %48 = vector.broadcast %cst_21 : f32 to vector<8x32xf32>
    %49 = vector.extract_strided_slice %46 {offsets = [0, 0], sizes = [8, 8], strides = [1, 1]} : vector<32x8xf32> to vector<8x8xf32>
    %50 = vector.extract_strided_slice %47 {offsets = [0, 0], sizes = [8, 32], strides = [1, 1]} : vector<32x32xf32> to vector<8x32xf32>
    %cst_22 = arith.constant dense<0.000000e+00> : vector<8x32xf32>
    %51 = tpu.matmul %49, %50, %cst_22 {dimension_numbers = #tpu.dot_dimension_numbers<[1], [0], [0], [1], [0, 0, 1, 1], [], []>} : vector<8x8xf32>, vector<8x32xf32>, vector<8x32xf32> -> vector<8x32xf32>
    %52 = arith.addf %48, %51 : vector<8x32xf32>
    %53 = vector.extract_strided_slice %46 {offsets = [8, 0], sizes = [8, 8], strides = [1, 1]} : vector<32x8xf32> to vector<8x8xf32>
    %54 = vector.extract_strided_slice %47 {offsets = [8, 0], sizes = [8, 32], strides = [1, 1]} : vector<32x32xf32> to vector<8x32xf32>
    %cst_23 = arith.constant dense<0.000000e+00> : vector<8x32xf32>
    %55 = tpu.matmul %53, %54, %cst_23 {dimension_numbers = #tpu.dot_dimension_numbers<[1], [0], [0], [1], [0, 0, 1, 1], [], []>} : vector<8x8xf32>, vector<8x32xf32>, vector<8x32xf32> -> vector<8x32xf32>
    %56 = arith.addf %52, %55 : vector<8x32xf32>
    %57 = vector.extract_strided_slice %46 {offsets = [16, 0], sizes = [8, 8], strides = [1, 1]} : vector<32x8xf32> to vector<8x8xf32>
    %58 = vector.extract_strided_slice %47 {offsets = [16, 0], sizes = [8, 32], strides = [1, 1]} : vector<32x32xf32> to vector<8x32xf32>
    %cst_24 = arith.constant dense<0.000000e+00> : vector<8x32xf32>
    %59 = tpu.matmul %57, %58, %cst_24 {dimension_numbers = #tpu.dot_dimension_numbers<[1], [0], [0], [1], [0, 0, 1, 1], [], []>} : vector<8x8xf32>, vector<8x32xf32>, vector<8x32xf32> -> vector<8x32xf32>
    %60 = arith.addf %56, %59 : vector<8x32xf32>
    %61 = vector.extract_strided_slice %46 {offsets = [24, 0], sizes = [8, 8], strides = [1, 1]} : vector<32x8xf32> to vector<8x8xf32>
    %62 = vector.extract_strided_slice %47 {offsets = [24, 0], sizes = [8, 32], strides = [1, 1]} : vector<32x32xf32> to vector<8x32xf32>
    %cst_25 = arith.constant dense<0.000000e+00> : vector<8x32xf32>
    %63 = tpu.matmul %61, %62, %cst_25 {dimension_numbers = #tpu.dot_dimension_numbers<[1], [0], [0], [1], [0, 0, 1, 1], [], []>} : vector<8x8xf32>, vector<8x32xf32>, vector<8x32xf32> -> vector<8x32xf32>
    %64 = arith.addf %60, %63 : vector<8x32xf32>
    %c0_26 = arith.constant 0 : index
    %c0_27 = arith.constant 0 : index
    %65 = vector.load %arg5[%c0_26, %c0_27] : memref<8x32xf32, #tpu.memory_space<vmem>>, vector<8x32xf32>
    %66 = vector.extract_strided_slice %65 {offsets = [0, 0], sizes = [1, 32], strides = [1, 1]} : vector<8x32xf32> to vector<1x32xf32>
    %67 = vector.extract_strided_slice %65 {offsets = [1, 0], sizes = [1, 32], strides = [1, 1]} : vector<8x32xf32> to vector<1x32xf32>
    %68 = vector.extract_strided_slice %65 {offsets = [2, 0], sizes = [1, 32], strides = [1, 1]} : vector<8x32xf32> to vector<1x32xf32>
    %69 = vector.extract_strided_slice %65 {offsets = [3, 0], sizes = [1, 32], strides = [1, 1]} : vector<8x32xf32> to vector<1x32xf32>
    %70 = vector.extract_strided_slice %65 {offsets = [4, 0], sizes = [1, 32], strides = [1, 1]} : vector<8x32xf32> to vector<1x32xf32>
    %71 = arith.addf %64, %1 : vector<8x32xf32>
    %cst_28 = arith.constant dense<0.000000e+00> : vector<8xf32>
    %72 = vector.multi_reduction <add>, %71, %cst_28 [1] : vector<8x32xf32> to vector<8xf32>
    %73 = vector.shape_cast %72 : vector<8xf32> to vector<8x1xf32>
    %cst_29 = arith.constant 3.200000e+01 : f32
    %74 = vector.broadcast %cst_29 : f32 to vector<8x1xf32>
    %75 = arith.divf %73, %74 : vector<8x1xf32>
    %76 = vector.broadcast %75 : vector<8x1xf32> to vector<8x32xf32>
    %77 = arith.subf %71, %76 : vector<8x32xf32>
    %78 = arith.mulf %77, %77 : vector<8x32xf32>
    %cst_30 = arith.constant dense<0.000000e+00> : vector<8xf32>
    %79 = vector.multi_reduction <add>, %78, %cst_30 [1] : vector<8x32xf32> to vector<8xf32>
    %80 = vector.shape_cast %79 : vector<8xf32> to vector<8x1xf32>
    %cst_31 = arith.constant 3.200000e+01 : f32
    %81 = vector.broadcast %cst_31 : f32 to vector<8x1xf32>
    %82 = arith.divf %80, %81 : vector<8x1xf32>
    %83 = vector.broadcast %75 : vector<8x1xf32> to vector<8x32xf32>
    %84 = arith.subf %71, %83 : vector<8x32xf32>
    %cst_32 = arith.constant 9.99999974E-6 : f32
    %85 = vector.broadcast %cst_32 : f32 to vector<8x1xf32>
    %86 = arith.addf %82, %85 : vector<8x1xf32>
    %87 = math.rsqrt %86 : vector<8x1xf32>
    %88 = vector.broadcast %87 : vector<8x1xf32> to vector<8x32xf32>
    %89 = arith.mulf %84, %88 : vector<8x32xf32>
    %90 = vector.broadcast %67 : vector<1x32xf32> to vector<8x32xf32>
    %91 = arith.mulf %89, %90 : vector<8x32xf32>
    %92 = vector.broadcast %68 : vector<1x32xf32> to vector<8x32xf32>
    %93 = arith.addf %91, %92 : vector<8x32xf32>
    %c0_33 = arith.constant 0 : index
    %c0_34 = arith.constant 0 : index
    %94 = vector.load %arg4[%c0_33, %c0_34] : memref<32x32xf32, #tpu.memory_space<vmem>>, vector<32x32xf32>
    %cst_35 = arith.constant dense<0.000000e+00> : vector<8x32xf32>
    %95 = tpu.matmul %93, %94, %cst_35 {dimension_numbers = #tpu.dot_dimension_numbers<[1], [0], [0], [1], [0, 0, 1, 1], [], []>} : vector<8x32xf32>, vector<32x32xf32>, vector<8x32xf32> -> vector<8x32xf32>
    %96 = vector.broadcast %66 : vector<1x32xf32> to vector<8x32xf32>
    %97 = arith.addf %95, %96 : vector<8x32xf32>
    %98 = arith.addf %97, %93 : vector<8x32xf32>
    %cst_36 = arith.constant dense<0.000000e+00> : vector<8xf32>
    %99 = vector.multi_reduction <add>, %98, %cst_36 [1] : vector<8x32xf32> to vector<8xf32>
    %100 = vector.shape_cast %99 : vector<8xf32> to vector<8x1xf32>
    %cst_37 = arith.constant 3.200000e+01 : f32
    %101 = vector.broadcast %cst_37 : f32 to vector<8x1xf32>
    %102 = arith.divf %100, %101 : vector<8x1xf32>
    %103 = vector.broadcast %102 : vector<8x1xf32> to vector<8x32xf32>
    %104 = arith.subf %98, %103 : vector<8x32xf32>
    %105 = arith.mulf %104, %104 : vector<8x32xf32>
    %cst_38 = arith.constant dense<0.000000e+00> : vector<8xf32>
    %106 = vector.multi_reduction <add>, %105, %cst_38 [1] : vector<8x32xf32> to vector<8xf32>
    %107 = vector.shape_cast %106 : vector<8xf32> to vector<8x1xf32>
    %cst_39 = arith.constant 3.200000e+01 : f32
    %108 = vector.broadcast %cst_39 : f32 to vector<8x1xf32>
    %109 = arith.divf %107, %108 : vector<8x1xf32>
    %110 = vector.broadcast %102 : vector<8x1xf32> to vector<8x32xf32>
    %111 = arith.subf %98, %110 : vector<8x32xf32>
    %cst_40 = arith.constant 9.99999974E-6 : f32
    %112 = vector.broadcast %cst_40 : f32 to vector<8x1xf32>
    %113 = arith.addf %109, %112 : vector<8x1xf32>
    %114 = math.rsqrt %113 : vector<8x1xf32>
    %115 = vector.broadcast %114 : vector<8x1xf32> to vector<8x32xf32>
    %116 = arith.mulf %111, %115 : vector<8x32xf32>
    %117 = vector.broadcast %69 : vector<1x32xf32> to vector<8x32xf32>
    %118 = arith.mulf %116, %117 : vector<8x32xf32>
    %119 = vector.broadcast %70 : vector<1x32xf32> to vector<8x32xf32>
    %120 = arith.addf %118, %119 : vector<8x32xf32>
    %c0_41 = arith.constant 0 : index
    %c0_42 = arith.constant 0 : index
    %c0_43 = arith.constant 0 : index
    %121 = vector.load %arg7[%c0_41, %c0_42, %c0_43] : memref<1x8x32xf32, #tpu.memory_space<vmem>>, vector<1x8x32xf32>
    %122 = vector.shape_cast %121 : vector<1x8x32xf32> to vector<8x32xf32>
    %123 = vector.shape_cast %120 : vector<8x32xf32> to vector<1x8x32xf32>
    tpu.vector_store %arg7[%c0_41, %c0_42, %c0_43], %123 {strides = array<i32>} : memref<1x8x32xf32, #tpu.memory_space<vmem>>, vector<1x8x32xf32>,
    return
  }
  func.func @transform_0(%arg0: i32) -> (i32, i32, i32) {
    %c0_i32 = arith.constant 0 : i32
    %c0_i32_0 = arith.constant 0 : i32
    %c0_i32_1 = arith.constant 0 : i32
    return %arg0, %c0_i32, %c0_i32_0 : i32, i32, i32
  }
  func.func @transform_1(%arg0: i32) -> (i32, i32) {
    %c0_i32 = arith.constant 0 : i32
    %c0_i32_0 = arith.constant 0 : i32
    %c0_i32_1 = arith.constant 0 : i32
    return %c0_i32, %c0_i32_0 : i32, i32
  }
  func.func @transform_2(%arg0: i32) -> (i32, i32) {
    %c0_i32 = arith.constant 0 : i32
    %c0_i32_0 = arith.constant 0 : i32
    %c0_i32_1 = arith.constant 0 : i32
    return %c0_i32, %c0_i32_0 : i32, i32
  }
  func.func @transform_3(%arg0: i32) -> (i32, i32) {
    %c0_i32 = arith.constant 0 : i32
    %c0_i32_0 = arith.constant 0 : i32
    %c0_i32_1 = arith.constant 0 : i32
    return %c0_i32, %c0_i32_0 : i32, i32
  }
  func.func @transform_4(%arg0: i32) -> (i32, i32) {
    %c0_i32 = arith.constant 0 : i32
    %c0_i32_0 = arith.constant 0 : i32
    %c0_i32_1 = arith.constant 0 : i32
    return %c0_i32, %c0_i32_0 : i32, i32
  }
  func.func @transform_5(%arg0: i32) -> (i32, i32) {
    %c0_i32 = arith.constant 0 : i32
    %c0_i32_0 = arith.constant 0 : i32
    %c0_i32_1 = arith.constant 0 : i32
    return %c0_i32, %c0_i32_0 : i32, i32
  }
  func.func @transform_6(%arg0: i32) -> (i32, i32, i32) {
    %c0_i32 = arith.constant 0 : i32
    %c0_i32_0 = arith.constant 0 : i32
    %c0_i32_1 = arith.constant 0 : i32
    return %arg0, %c0_i32, %c0_i32_0 : i32, i32, i32
  }
}

</mosaic_0001>

<bundles_post_ra>
// kernel: tpu_custom_call.1
= control target key start
LH: loop header
LB: loop body
LE: loop exit
PB: predicated region body
PF: predicated region fallthrough
CT: control target
= control target key end

     0   :  { %11 = vsyncpa [#allocation3], 0  ;;  %s3025_s0 = inlined_call_operand.hbm [shape: f32[4,8,32], index: 0, kind: input, shape index: {}]   ;;  %s3026_s1 = inlined_call_operand.hbm [shape: f32[32,96], index: 1, kind: input, shape index: {}]   ;;  %s3027_s2 = inlined_call_operand.hbm [shape: f32[32,32], index: 2, kind: input, shape index: {}]   ;;  %s3028_s3 = inlined_call_operand.hbm [shape: f32[32,32], index: 3, kind: input, shape index: {}]   ;;  %s3029_s4 = inlined_call_operand.vmem [shape: f32[8,32], index: 4, kind: input, shape index: {}]   ;;  %s3030_s5 = inlined_call_operand.hbm [shape: f32[32,72], index: 5, kind: input, shape index: {}]   ;;  %s3031_s6 = inlined_call_operand.hbm [shape: f32[4,8,32], index: 6, kind: output, shape index: {}]  }
   0x1   :  { %13 = vsyncpa [#allocation3 + $0x1], 0 }
   0x2   :  { %14 = vsyncpa [#allocation6], 0 }
   0x3   :  { %15 = vsyncpa [#allocation9], 0 }
   0x4   :  { %16 = vsyncpa [#allocation4], 0 }
   0x5   :  { %18 = vsyncpa [#allocation4 + $0x1], 0  ;;  %s2589_s21 = smov 0   ;;  %s2591_s22 = smov 0  }
   0x6   :  { %s2593_s23 = smov 0   ;;  %s2595_s24 = smov 0  }
   0x7 LB: > { %s2535_s25 = smov [#allocation5]   ;;  %s2610_s27 = sadd.s32 4294967295, %s2533_s24   ;;  %s2533_s24 = sphi %s2595_s24, %s3054_s24   ;;  %s2529_s23 = sphi %s2593_s23, %s3053_s23   ;;  %s2525_s22 = sphi %s2591_s22, %s3052_s22   ;;  %s2521_s21 = sphi %s2589_s21, %s3051_s21  }
   0x8   : > { %s198_s26 = sshll.u32 %s2535_s25, 4  ;;  %p1949_p0 = scmp.ge.s32.totalorder %s2533_s24, 1  ;;  %s2615_s26 = int_to_ptr.vmem [resolvable:$true] %s198_s26 }
   0x9   : > { %p3032_p1 = scmp.eq.s32.totalorder %s2610_s27, 0  ;;  %p186_p2 = scmp.lt.s32.totalorder %s2533_s24, 5 }
   0xa   : > { %s2536_s29 = smov [#allocation8]   ;;  %s2537_s8 = smov [#allocation7]  }
   0xb   : > { %p2617_p3 = pnand %p1949_p0, %p186_p2  ;;  %s224_s30 = sshll.u32 %s2536_s29, 4  ;;  %s2629_s30 = int_to_ptr.vmem [resolvable:$true] %s224_s30 }
   0xc   : > { %s211_s9 = sshll.u32 %s2537_s8, 4  ;;  %s2317_s12 = scalar_lea.hbm %s3026_s1, 512  ;;  %s2631_s9 = int_to_ptr.vmem [resolvable:$true] %s211_s9 }
   0xd   : > { %s3035_s28 = scalar_select %p2617_p3, 1, 0 }
   0xe   : > { %p2217_p4 = pneg %p2617_p3  ;;  %p2318_p6 = scmp.ne.s32.totalorder %s3026_s1, %s2317_s12 }
   0xf   : > { %p2324_p10 = scmp.lt.u32.totalorder %s2317_s12, %s3026_s1 }
  0x10   : > { %p2625_p5 = pnand %p2217_p4, %p3032_p1 }
  0x12   : > { %p2641_p7 = pneg %p2625_p5 }
  0x14   : > { %p2320_p8 = pnand %p2641_p7, %p2318_p6 }
  0x16   : > { %p2321_p9 = pneg %p2320_p8 }
  0x18   : > { %p2326_p11 = pnand %p2324_p10, %p2321_p9 }
  0x1a   : > { %2329 = shalt.err (!%p2326_p11)
}
  0x1b   : > { %s2330_s18 = scalar_lea.vmem %s2615_s26, 512  ;;  %p2338_p2 = scmp.lt.s32.totalorder %s2615_s26, %s2615_s26 }
  0x1c   : > { %p2331_p12 = scmp.ne.s32.totalorder %s2615_s26, %s2330_s18  ;;  %p2339_p4 = scmp.lt.s32.totalorder %s2330_s18, %s2330_s18 }
  0x1e   : > { %p2333_p13 = pnand %p2331_p12, %p2641_p7  ;;  %p2340_p6 = por %p2339_p4, %p2338_p2 }
  0x20   : > { %p2334_p0 = pneg %p2333_p13 }
  0x22   : > { %p2341_p8 = pnand %p2340_p6, %p2334_p0 }
  0x24   : > { %2344 = shalt.err (!%p2341_p8)
}
  0x25   : > { %s2538_s19 = smov 128   ;;  %s2539_s20 = smov 8  }
  0x26   : > { %2220 = dma.hbm_to_vmem [thread:$0]  (!%p2625_p5), %s3026_s1, 512, %s2615_s26, [#allocation6], %s2538_s19, %s2538_s19, %s2539_s20  }
  0x27   : > { %s2345_s11 = scalar_lea.hbm %s3028_s3, 512 }
  0x28   : > { %p2346_p9 = scmp.ne.s32.totalorder %s3028_s3, %s2345_s11  ;;  %p2352_p12 = scmp.lt.u32.totalorder %s2345_s11, %s3028_s3 }
  0x2a   : > { %p2348_p10 = pnand %p2346_p9, %p2641_p7 }
  0x2c   : > { %p2349_p11 = pneg %p2348_p10 }
  0x2e   : > { %p2354_p13 = pnand %p2352_p12, %p2349_p11 }
  0x30   : > { %2357 = shalt.err (!%p2354_p13)
}
  0x31   : > { %s2358_s26 = scalar_lea.vmem %s2629_s30, 512  ;;  %p2366_p6 = scmp.lt.s32.totalorder %s2629_s30, %s2629_s30 }
  0x32   : > { %p2359_p0 = scmp.ne.s32.totalorder %s2629_s30, %s2358_s26  ;;  %p2367_p8 = scmp.lt.s32.totalorder %s2358_s26, %s2358_s26 }
  0x34   : > { %p2361_p2 = pnand %p2359_p0, %p2641_p7  ;;  %p2368_p9 = por %p2367_p8, %p2366_p6 }
  0x36   : > { %p2362_p4 = pneg %p2361_p2 }
  0x38   : > { %p2369_p10 = pnand %p2368_p9, %p2362_p4 }
  0x3a   : > { %2372 = shalt.err (!%p2369_p10)
}
  0x3b   : > { %2226 = dma.hbm_to_vmem [thread:$0]  (!%p2625_p5), %s3028_s3, 512, %s2629_s30, [#allocation9], %s2538_s19, %s2538_s19, %s2539_s20  }
  0x3c   : > { %s2373_s8 = scalar_lea.hbm %s3027_s2, 512 }
  0x3d   : > { %p2374_p11 = scmp.ne.s32.totalorder %s3027_s2, %s2373_s8  ;;  %p2380_p0 = scmp.lt.u32.totalorder %s2373_s8, %s3027_s2 }
  0x3f   : > { %p2376_p12 = pnand %p2374_p11, %p2641_p7 }
  0x41   : > { %p2377_p13 = pneg %p2376_p12 }
  0x43   : > { %p2382_p2 = pnand %p2380_p0, %p2377_p13 }
  0x45   : > { %2385 = shalt.err (!%p2382_p2)
}
  0x46   : > { %s2386_s30 = scalar_lea.vmem %s2631_s9, 512  ;;  %p2394_p9 = scmp.lt.s32.totalorder %s2631_s9, %s2631_s9 }
  0x47   : > { %p2387_p4 = scmp.ne.s32.totalorder %s2631_s9, %s2386_s30  ;;  %p2395_p10 = scmp.lt.s32.totalorder %s2386_s30, %s2386_s30 }
  0x49   : > { %p2389_p6 = pnand %p2387_p4, %p2641_p7  ;;  %p2396_p11 = por %p2395_p10, %p2394_p9 }
  0x4b   : > { %p2390_p8 = pneg %p2389_p6 }
  0x4d   : > { %p2397_p12 = pnand %p2396_p11, %p2390_p8 }
  0x4f   : > { %2400 = shalt.err (!%p2397_p12)
}
  0x50   : > { %2223 = dma.hbm_to_vmem [thread:$0]  (!%p2625_p5), %s3027_s2, 512, %s2631_s9, [#allocation6], %s2538_s19, %s2538_s19, %s2539_s20  }
  0x51   : > { %s2540_s26 = smov [#allocation10]   ;;  %s2401_s29 = scalar_lea.hbm %s3030_s5, 512 }
  0x52   : > { %s240_s17 = sshll.u32 %s2540_s26, 4  ;;  %p2402_p13 = scmp.ne.s32.totalorder %s3030_s5, %s2401_s29  ;;  %s241_s17 = int_to_ptr.vmem [resolvable:$true] %s240_s17 }
  0x53   : > { %p2408_p4 = scmp.lt.u32.totalorder %s2401_s29, %s3030_s5 }
  0x54   : > { %p2404_p0 = pnand %p2402_p13, %p2641_p7 }
  0x56   : > { %p2405_p2 = pneg %p2404_p0 }
  0x58   : > { %p2410_p6 = pnand %p2408_p4, %p2405_p2 }
  0x5a   : > { %2413 = shalt.err (!%p2410_p6)
}
  0x5b   : > { %s2414_s9 = scalar_lea.vmem %s241_s17, 512  ;;  %p2422_p11 = scmp.lt.s32.totalorder %s241_s17, %s241_s17 }
  0x5c   : > { %p2415_p8 = scmp.ne.s32.totalorder %s241_s17, %s2414_s9  ;;  %p2423_p12 = scmp.lt.s32.totalorder %s2414_s9, %s2414_s9 }
  0x5e   : > { %p2417_p9 = pnand %p2415_p8, %p2641_p7  ;;  %p2424_p1 = por %p2423_p12, %p2422_p11 }
  0x60   : > { %p2418_p10 = pneg %p2417_p9 }
  0x62   : > { %p2425_p3 = pnand %p2424_p1, %p2418_p10 }
  0x64   : > { %2428 = shalt.err (!%p2425_p3)
}
  0x65   : > { %2229 = dma.hbm_to_vmem [thread:$0]  (!%p2625_p5), %s3030_s5, 512, %s241_s17, [#allocation9], %s2538_s19, %s2538_s19, %s2539_s20  }
  0x66   : > { %s1948_s7 = sadd.s32 4294967294, %s2533_s24   ;;  %s2740_s15 = sadd.s32 1, %s2533_s24  }
  0x67   : > { %s28_s14 = ssub.s32 %s2533_s24, %s2740_s15  ;;  %s31_s16 = sadd.s32 1, %s2529_s23 }
  0x68   : > { %p29_p1 = scmp.eq.s32.totalorder %s28_s14, 0  ;;  %p38_p3 = scmp.ne.s32.totalorder %s2529_s23, %s2525_s22 }
  0x69   : > { %p39_p7 = scmp.eq.s32.totalorder %s2533_s24, 0  ;;  %p44_p13 = scmp.ne.s32.totalorder %s2525_s22, %s2521_s21 }
  0x6a   : > { %s2751_s26 = scalar_select %p29_p1, %s2529_s23, %s31_s16  }
  0x6b   : > { %p2753_p0 = por %p39_p7, %p38_p3  ;;  %p3039_p2 = scmp.eq.s32.totalorder %s2610_s27, 0 }
  0x6c   : > { %p173_p4 = scmp.eq.s32.totalorder %s2610_s27, 3  ;;  %p179_p6 = scmp.eq.s32.totalorder %s1948_s7, 3 }
  0x6d   : > { %p2759_p5 = por %p3039_p2, %p44_p13  ;;  %p2242_p8 = scmp.lt.s32.totalorder %s2533_s24, 4 }
  0x6e   : > { %s254_s20 = sand.u32 1, %s2529_s23   ;;  %p2766_p9 = por %p173_p4, %p38_p3 }
  0x6f   : > { %p2770_p10 = por %p179_p6, %p44_p13  ;;  %s1955_s29 = sshll.u32 %s254_s20, 3 }
  0x70   : > { %s3041_s17 = scalar_select %p2766_p9, 1, 0 }
  0x71   : > { %s3042_s25 = scalar_select %p2770_p10, 1, 0 }
  0x72   : > { %s1956_s8 = sshll.u32 %s2533_s24, 7  ;;  %s258_s9 = scalar_lea.vmem [#allocation2], %s1955_s29 }
  0x73   : > { %s2778_s12 = scalar_lea.hbm %s3025_s0, %s1956_s8  ;;  %s265_s13 = sshll.u32 %s258_s9, 4  ;;  %s2780_s13 = int_to_ptr.vmem [resolvable:$true] %s265_s13 }
  0x74   : > { %p2784_p11 = pnand %p2242_p8, %p2753_p0  ;;  %s255_s7 = scalar_lea.sflag [#allocation3], %s254_s20 }
  0x75   : > { %s2429_s14 = scalar_lea.hbm %s2778_s12, 128  ;;  %s2434_s8 = scalar_lea.hbm %s3025_s0, 512 }
  0x76   : > { %p2430_p12 = scmp.ne.s32.totalorder %s2778_s12, %s2429_s14  ;;  %p2431_p1 = pneg %p2784_p11 }
  0x77   : > { %p2435_p13 = scmp.lt.u32.totalorder %s2778_s12, %s3025_s0  ;;  %p2436_p0 = scmp.lt.u32.totalorder %s2434_s8, %s2429_s14 }
  0x78   : > { %p2432_p3 = pnand %p2431_p1, %p2430_p12  ;;  %p2438_p4 = scmp.lt.u32.totalorder %s2429_s14, %s2778_s12 }
  0x79   : > { %p2437_p2 = por %p2436_p0, %p2435_p13 }
  0x7a   : > { %p2433_p7 = pneg %p2432_p3 }
  0x7b   : > { %p2439_p6 = por %p2438_p4, %p2437_p2 }
  0x7d   : > { %p2440_p8 = pnand %p2439_p6, %p2433_p7 }
  0x7f   : > { %2443 = shalt.err (!%p2440_p8)
}
  0x80   : > { %s2444_s20 = scalar_lea.vmem %s2780_s13, 128  ;;  %s2541_s11 = smov [#allocation2]  }
  0x81   : > { %p2445_p12 = scmp.ne.s32.totalorder %s2780_s13, %s2444_s20  ;;  %s2449_s9 = sshll.u32 %s2541_s11, 4  ;;  %s2450_s9 = int_to_ptr.vmem [resolvable:$false] %s2449_s9 }
  0x82   : > { %s2451_s16 = scalar_lea.vmem %s2450_s9, 256  ;;  %p2452_p9 = scmp.lt.s32.totalorder %s2780_s13, %s2450_s9 }
  0x83   : > { %p2447_p3 = pnand %p2445_p12, %p2431_p1  ;;  %p2453_p13 = scmp.lt.s32.totalorder %s2451_s16, %s2444_s20 }
  0x85   : > { %p2448_p10 = pneg %p2447_p3  ;;  %p2454_p0 = por %p2453_p13, %p2452_p9 }
  0x87   : > { %p2455_p2 = pnand %p2454_p0, %p2448_p10 }
  0x89   : > { %2458 = shalt.err (!%p2455_p2)
}
  0x8a   : > { %2233 = dma.hbm_to_vmem [thread:$0]  (!%p2784_p11), %s2778_s12, 128, %s2780_s13, %s255_s7  }
  0x8b   : > { %p3044_p7 = scmp.ne.s32.totalorder %s3035_s28, 0 }
  0x8c   : > { %s2816_s14 = sand.u32 (!%p3044_p7), 1, %s2525_s22  }
  0x8d   : > { %274 = sbr.rel (%p3044_p7) target bundleno = 2662 (0xa66), region = 44  ;;  %s1958_s29 = sshll.u32 (!%p3044_p7), %s2816_s14, 3 }
  0x8e   : > { %s277_s8 = scalar_lea.sflag (!%p3044_p7), [#allocation3], %s2816_s14  ;;  %s280_s18 = scalar_lea.vmem (!%p3044_p7), [#allocation2], %s1958_s29 }
  0x94   : > { %2504 = dma.done.wait (%p2759_p5), %s277_s8, 128  }
  0x95   : > { %2506 = vsyncadd (%p2759_p5), %s277_s8, 4294967168  ;;  %p3045_p9 = scmp.eq.s32.totalorder %s2610_s27, 0 }
  0x97   : > { %2508 = dma.done.wait (%p3045_p9), [#allocation6], 1024   ;;  %p3046_p10 = pmov %p3045_p9 }
  0x98   : > { %p3047_p11 = pmov %p3045_p9 }
  0x99   : > { %2510 = vsyncadd (%p3046_p10), [#allocation6], 4294966272 }
  0x9a   : > { %2512 = dma.done.wait (%p3047_p11), [#allocation9], 1024   ;;  %p3048_p1 = pmov %p3045_p9 }
  0x9b   : > { %v2542_v0 = vmov 0.0|0.0   ;;  %vm2543_vm0 = vmmov 0   ;;  %v2544_v1 = vmov 0.0   ;;  %v330_v2 = vld [vmem:[#allocation5] sm:$0xff]  ;;  %v331_v3 = vld [vmem:[#allocation5 + $0x8] sm:$0xff]  ;;  %v332_v4 = vld [vmem:[#allocation5 + $0x10] sm:$0xff] }
  0x9c   : > { %2514 = vsyncadd (%p3048_p1), [#allocation9], 4294966272  ;;  %2173 = vmatprep.subr.bf16.mxu0 %v2542_v0  ;;  %2071 = vmatprep.mubr.msk.f32.mxu0 %vm2543_vm0, %v2544_v1  ;;  %v2174_v5 = vpack.c.bf16 %v331_v3, %v330_v2  ;;  %v333_v6 = vld [vmem:[#allocation5 + $0x18] sm:$0xff]  ;;  %v2837_v7 = vld [vmem:[#allocation10] sm:$0xff]  ;;  %s2545_s28 = smov 64   ;;  %vm334_vm1 = vcmask 261120  }
  0x9d   : > { %412 = vrot.lane.b32.xlu0 %v2837_v7, %s2545_s28  ;;  %v2841_v8 = vld [vmem:[#allocation10 + $0x10] sm:$0xff]  ;;  %v2177_v9 = vpack.c.bf16 %v333_v6, %v332_v4  ;;  %v2845_v10 = vld [vmem:[#allocation10 + $0x8] sm:$0xff]  ;;  %v2848_v11 = vld [vmem:[#allocation10 + $0x18] sm:$0xff]  ;;  %s2546_s19 = smov 96   ;;  %vm420_vm2 = vcmask 64512   ;;  %s2547_s12 = smov 48  }
  0x9e   : > { %2175 = vmatpush3.bf16.msra.mxu0 %v2174_v5  ;;  %416 = vrot.lane.b32.xlu1 %v2841_v8, %s2545_s28  ;;  %v2852_v12 = vld [vmem:[%s280_s18] sm:$0xff]  ;;  %s2548_s13 = smov 40   ;;  %s2549_s30 = smov 56  }
  0x9f   : > { %2176 = vmatprep.subr.bf16.mxu0 %v2542_v0  ;;  %s2550_s7 = smov 120   ;;  %s2551_s10 = smov 112  }
  0xa0   : > { %s2552_s20 = smov 104   ;;  %s2004_s16 = sshll.u32 %s2610_s27, 7 }
  0xa1   : > { %414 = vrot.lane.b32.xlu0 %v2845_v10, %s2545_s28  ;;  %s324_s8 = scalar_lea.vmem [#allocation11], %s1958_s29  ;;  %p3049_p4 = scmp.ne.s32.totalorder %s3041_s17, 0 }
  0xa2   : > { %2178 = vmatpush3.bf16.msra.mxu0 %v2177_v9  ;;  %418 = vrot.lane.b32.xlu1 %v2848_v11, %s2545_s28  ;;  %s1840_s18 = sshll.u32 %s324_s8, 4  ;;  %s2553_s27 = smov [#allocation11]   ;;  %s2983_s18 = int_to_ptr.vmem [resolvable:$true] %s1840_s18 }
  0xa3   : > { %2090 = vmatprep.subr.mxu0 %v2544_v1  ;;  %s2463_s29 = sshll.u32 %s2553_s27, 4  ;;  %s2464_s29 = int_to_ptr.vmem [resolvable:$false] %s2463_s29 }
  0xa4   : > { %p2466_p12 = scmp.lt.s32.totalorder %s2983_s18, %s2464_s29 }
  0xa5   : > { %2072 = vmatmul.mubr.msk.f32.vlgmr.msra.gmra.mrb[0].mxu0 %vm334_vm1, %v2852_v12 }
  0xa6   : > { %2092 = vmatprep.mubr.msk.f32.mxu0 %vm2543_vm0, %v2544_v1  ;;  %514 = vrot.lane.b32.xlu1 %v2837_v7, %s2546_s19 }
  0xaa   : > { %518 = vrot.lane.b32.xlu1 %v2841_v8, %s2546_s19 }
 0x10f   : > { %v413_v13 = vpop.permute.xlu0 %412 }
 0x110   : > { %2076 = vmatprep.mubr.msk.f32.mxu1 %vm420_vm2, %v413_v13  ;;  %v417_v14 = vpop.permute.xlu1 %416 }
 0x113   : > { %v415_v16 = vpop.permute.xlu0 %414 }
 0x114   : > { %v419_v18 = vpop.permute.xlu1 %418 }
 0x118   : > { %v515_v20 = vpop.permute.xlu1 %514 }
 0x11c   : > { %v519_v27 = vpop.permute.xlu1 %518 }
 0x178   : > { %v2864_v15 = vpop.f32.mrb[0].mxu0 }
 0x179   : > { %531 = vrot.lane.b32.xlu0 %v2864_v15, %s2546_s19  ;;  %v2073_v17 = vpop.f32.mrb[1].mxu0  ;;  %2074 = vmatprep.subr.mxu1 %v2864_v15 }
 0x17a   : > { %2075 = vmatpush3.msra.mxu1 %v2864_v15 }
 0x17b   : > { %2077 = vmatmul.mubr.msk.f32.vlgmr.msra.gmra.mrb[0].mxu1 %vm420_vm2, %v415_v16 }
 0x17c   : > { %2079 = vmatprep.mubr.msk.f32.mxu1 %vm420_vm2, %v417_v14 }
 0x17d   : > { %516 = vrot.lane.b32.xlu0 %v2845_v10, %s2546_s19 }
 0x17f   : > { %2080 = vmatmul.mubr.msk.f32.gmra.mrb[2].mxu1 %vm420_vm2, %v419_v18 }
 0x181   : > { %520 = vrot.lane.b32.xlu0 %v2848_v11, %s2546_s19 }
 0x1eb   : > { %v532_v19 = vpop.permute.xlu0 %531 }
 0x1ec   : > { %2082 = vmatprep.subr.msk.mxu1 %vm334_vm1, %v532_v19 }
 0x1ed   : > { %2083 = vmatpush3.xpose.msk.msra.mxu1 %vm334_vm1, %v532_v19 }
 0x1ef   : > { %v517_v21 = vpop.permute.xlu0 %516 }
 0x1f3   : > { %v521_v25 = vpop.permute.xlu0 %520 }
 0x24e   : > { %v2078_v22 = vpop.f32.mrb[0].mxu1 }
 0x24f   : > { %v495_v23 = vpop.f32.mrb[1].mxu1  ;;  %v527_v26 = vmul.f32 %v2078_v22, %v517_v21 }
 0x250   : > { %v526_v24 = vmul.f32 %v515_v20, %v495_v23 }
 0x252   : > { %v2081_v28 = vpop.f32.mrb[2].mxu1  ;;  %2084 = vmatprep.mubr.msk.f32.mxu1 %vm334_vm1, %v526_v24 }
 0x253   : > { %v505_v29 = vpop.f32.mrb[3].mxu1  ;;  %2085 = vmatmul.mubr.msk.f32.vlgmr.msra.gmra.mrb[4].mxu1 %vm334_vm1, %v527_v26  ;;  %v529_v30 = vmul.f32 %v2081_v28, %v521_v25 }
 0x254   : > { %v528_v31 = vmul.f32 %v519_v27, %v505_v29 }
 0x256   : > { %2087 = vmatprep.mubr.msk.f32.mxu1 %vm334_vm1, %v528_v31 }
 0x257   : > { %2088 = vmatmul.mubr.msk.f32.gmra.mrb[6].mxu1 %vm334_vm1, %v529_v30 }
 0x326   : > { %v2086_v32 = vpop.f32.mrb[4].mxu1 }
 0x327   : > { %v613_v33 = vpop.f32.mrb[5].mxu1  ;;  %v635_v34 = vsel %vm420_vm2, %v2086_v32, -inf }
 0x328   : > { %636 = vmax.xlane.f32.xlu0 %v635_v34  ;;  %v632_v35 = vsel %vm420_vm2, %v613_v33, -inf }
 0x329   : > { %633 = vmax.xlane.f32.xlu1 %v632_v35 }
 0x32a   : > { %v2089_v36 = vpop.f32.mrb[6].mxu1 }
 0x32b   : > { %v623_v37 = vpop.f32.mrb[7].mxu1  ;;  %v641_v38 = vsel %vm420_vm2, %v2089_v36, -inf }
 0x32c   : > { %v638_v39 = vsel %vm420_vm2, %v623_v37, -inf }
 0x32d   : > { %642 = vmax.xlane.f32.xlu1 %v641_v38  ;;  %639 = vmax.xlane.f32.xlu0 %v638_v39  ;;  %v1398_v39 = vld [vmem:[#allocation7 + $0x10] sm:$0xff] }
 0x3b5   : > { %v637_v40 = vpop.xlane.xlu0 %636 }
 0x3b6   : > { %v645_v41 = vsub.f32 %v2086_v32, %v637_v40  ;;  %v634_v42 = vpop.xlane.xlu1 %633 }
 0x3b7   : > { %v644_v43 = vsub.f32 %v613_v33, %v634_v42  ;;  %v1399_v42 = vld [vmem:[#allocation7 + $0x18] sm:$0xff] }
 0x3b8   : > { %v650_v44 = vmul.f32 1.442695, %v645_v41 }
 0x3b9   : > { %v648_v45 = vmul.f32 1.442695, %v644_v43 }
 0x3ba   : > { %2297 = vpow2.f32 %v650_v44  ;;  %v643_v46 = vpop.xlane.xlu1 %642  ;;  %v640_v47 = vpop.xlane.xlu0 %639 }
 0x3bb   : > { %2299 = vpow2.f32 %v648_v45  ;;  %v647_v48 = vsub.f32 %v2089_v36, %v643_v46  ;;  %v646_v49 = vsub.f32 %v623_v37, %v640_v47  ;;  %v1396_v36 = vld [vmem:[#allocation7] sm:$0xff] }
 0x3bd   : > { %v654_v50 = vmul.f32 1.442695, %v647_v48  ;;  %v652_v51 = vmul.f32 1.442695, %v646_v49 }
 0x3bf   : > { %2301 = vpow2.f32 %v654_v50 }
 0x3c0   : > { %2303 = vpow2.f32 %v652_v51 }
 0x3c4   : > { %v2298_v52 = vpop.eup %2297 }
 0x3c5   : > { %v2300_v53 = vpop.eup %2299  ;;  %v659_v54 = vsel %vm420_vm2, %v2298_v52, 0.0 }
 0x3c6   : > { %660 = vadd.xlane.f32.xlu1 %v659_v54  ;;  %v656_v55 = vsel %vm420_vm2, %v2300_v53, 0.0 }
 0x3c7   : > { %657 = vadd.xlane.f32.xlu0 %v656_v55 }
 0x3c9   : > { %v2302_v56 = vpop.eup %2301 }
 0x3ca   : > { %v665_v57 = vsel %vm420_vm2, %v2302_v56, 0.0  ;;  %v2304_v58 = vpop.eup %2303 }
 0x3cb   : > { %666 = vadd.xlane.f32.xlu0 %v665_v57  ;;  %v662_v59 = vsel %vm420_vm2, %v2304_v58, 0.0 }
 0x3cf   : > { %663 = vadd.xlane.f32.xlu0 %v662_v59 }
 0x3d7   : > { %676 = vrot.lane.b32.xlu1 %v2864_v15, %s2545_s28 }
 0x3db   : > { %1028 = vrot.lane.b32.xlu1 %v2864_v15, %s2547_s12  ;;  %s2981_s12 = scalar_lea.hbm %s3031_s6, %s2004_s16 }
 0x3df   : > { %1212 = vrot.lane.b32.xlu1 %v2864_v15, %s2548_s13  ;;  %s1827_s13 = scalar_lea.sflag [#allocation4], %s2816_s14 }
 0x3e3   : > { %828 = vrot.lane.b32.xlu1 %v2837_v7, %s2550_s7 }
 0x3e5   : > { %752 = vrot.lane.b32.xlu0 %v2864_v15, %s2549_s30  ;;  %s2459_s30 = scalar_lea.vmem %s2983_s18, 128 }
 0x3e6   : > { %p2460_p5 = scmp.ne.s32.totalorder %s2983_s18, %s2459_s30 }
 0x3e7   : > { %832 = vrot.lane.b32.xlu1 %v2841_v8, %s2550_s7 }
 0x3e8   : > { %p2461_p6 = pnand %p2460_p5, %p3049_p4 }
 0x3e9   : > { %830 = vrot.lane.b32.xlu0 %v2845_v10, %s2550_s7 }
 0x3ea   : > { %p2462_p8 = pneg %p2461_p6 }
 0x3eb   : > { %1104 = vrot.lane.b32.xlu1 %v2837_v7, %s2551_s10 }
 0x3ed   : > { %834 = vrot.lane.b32.xlu0 %v2848_v11, %s2550_s7  ;;  %s2465_s7 = scalar_lea.vmem %s2464_s29, 256 }
 0x3ee   : > { %p2467_p3 = scmp.lt.s32.totalorder %s2465_s7, %s2459_s30 }
 0x3ef   : > { %1108 = vrot.lane.b32.xlu1 %v2841_v8, %s2551_s10 }
 0x3f0   : > { %p2468_p13 = por %p2467_p3, %p2466_p12 }
 0x3f1   : > { %1106 = vrot.lane.b32.xlu0 %v2845_v10, %s2551_s10 }
 0x3f2   : > { %p2469_p0 = pnand %p2468_p13, %p2462_p8 }
 0x3f3   : > { %1288 = vrot.lane.b32.xlu1 %v2837_v7, %s2552_s20 }
 0x3f5   : > { %1110 = vrot.lane.b32.xlu0 %v2848_v11, %s2551_s10 }
 0x3f7   : > { %1292 = vrot.lane.b32.xlu1 %v2841_v8, %s2552_s20 }
 0x3f9   : > { %1290 = vrot.lane.b32.xlu0 %v2845_v10, %s2552_s20 }
 0x3fd   : > { %1294 = vrot.lane.b32.xlu0 %v2848_v11, %s2552_s20 }
 0x453   : > { %v661_v60 = vpop.xlane.xlu1 %660 }
 0x454   : > { %v658_v61 = vpop.xlane.xlu0 %657 }
 0x455   : > { %2305 = vrcp.f32 %v658_v61  ;;  %v1721_v61 = vld [vmem:[#allocation8 + $0x8] sm:$0xff] }
 0x456   : > { %2307 = vrcp.f32 %v661_v60  ;;  %v1720_v60 = vld [vmem:[#allocation8] sm:$0xff] }
 0x457   : > { %v677_v62 = vpop.permute.xlu1 %676 }
 0x458   : > { %2091 = vmatpush3.msra.mxu0 %v677_v62  ;;  %v667_v63 = vpop.xlane.xlu0 %666  ;;  %v2180_v62 = vpack.c.bf16 %v1721_v61, %v1720_v60 }
 0x459   : > { %2095 = vmatprep.subr.mxu0 %v2544_v1 }
 0x45b   : > { %v1029_v13 = vpop.permute.xlu1 %1028 }
 0x45c   : > { %v664_v2 = vpop.xlane.xlu0 %663 }
 0x45d   : > { %2309 = vrcp.f32 %v664_v2  ;;  %v1723_v2 = vld [vmem:[#allocation8 + $0x18] sm:$0xff] }
 0x45e   : > { %2311 = vrcp.f32 %v667_v63  ;;  %v1722_v63 = vld [vmem:[#allocation8 + $0x10] sm:$0xff] }
 0x45f   : > { %v2306_v3 = vpop.eup %2305  ;;  %v1213_v17 = vpop.permute.xlu1 %1212 }
 0x460   : > { %v669_v4 = vmul.f32 %v2306_v3, %v2300_v53  ;;  %v753_v5 = vpop.permute.xlu0 %752  ;;  %v2308_v6 = vpop.eup %2307  ;;  %v2183_v3 = vpack.c.bf16 %v1723_v2, %v1722_v63 }
 0x461   : > { %v671_v9 = vmul.f32 %v2308_v6, %v2298_v52 }
 0x462   : > { %2093 = vmatmul.mubr.msk.f32.vlgmr.msra.gmra.mrb[2].mxu0 %vm420_vm2, %v669_v4 }
 0x463   : > { %2096 = vmatpush3.msra.mxu0 %v753_v5  ;;  %2097 = vmatprep.mubr.msk.f32.mxu0 %vm2543_vm0, %v2544_v1  ;;  %v829_v19 = vpop.permute.xlu1 %828  ;;  %v1710_v5 = vlaneseq }
 0x464   : > { %2116 = vmatprep.subr.mxu0 %v2544_v1  ;;  %2102 = vmatprep.mubr.msk.f32.mxu1 %vm420_vm2, %v829_v19  ;;  %v831_v23 = vpop.permute.xlu0 %830 }
 0x466   : > { %2098 = vmatmul.mubr.msk.f32.vlgmr.msra.gmra.mrb[4].mxu0 %vm420_vm2, %v671_v9  ;;  %v1711_v9 = vshrl.u32 %v1710_v5, 7 }
 0x467   : > { %v2310_v14 = vpop.eup %2309  ;;  %2117 = vmatpush3.msra.mxu0 %v1029_v13  ;;  %2118 = vmatprep.mubr.msk.f32.mxu0 %vm2543_vm0, %v2544_v1  ;;  %v833_v25 = vpop.permute.xlu1 %832 }
 0x468   : > { %v673_v15 = vmul.f32 %v2310_v14, %v2304_v58  ;;  %2129 = vmatprep.subr.mxu0 %v2544_v1  ;;  %v2312_v16 = vpop.eup %2311  ;;  %v835_v28 = vpop.permute.xlu0 %834  ;;  %v1712_v13 = vsub.s32 1, %v1711_v9  ;;  %v1694_v14 = vld [vmem:[%s3029_s4] sm:$0xff] }
 0x469   : > { %v675_v18 = vmul.f32 %v2312_v16, %v2302_v56 }
 0x46a   : > { %2119 = vmatmul.mubr.msk.f32.vlgmr.msra.gmra.mrb[6].mxu0 %vm420_vm2, %v673_v15  ;;  %v1717_v15 = vsub.s32 2, %v1711_v9  ;;  %v1713_v16 = vrot.slane %v1694_v14, %v1712_v13 }
 0x46b   : > { %2130 = vmatpush3.msra.mxu0 %v1213_v17  ;;  %2131 = vmatprep.mubr.msk.f32.mxu0 %vm2543_vm0, %v2544_v1  ;;  %v1105_v31 = vpop.permute.xlu1 %1104 }
 0x46c   : > { %2142 = vmatprep.subr.mxu0 %v2544_v1  ;;  %v1107_v32 = vpop.permute.xlu0 %1106  ;;  %v1718_v19 = vrot.slane %v1694_v14, %v1717_v15 }
 0x46e   : > { %2132 = vmatmul.mubr.msk.f32.vlgmr.msra.gmra.mrb[8].mxu0 %vm420_vm2, %v675_v18 }
 0x46f   : > { %2144 = vmatprep.mubr.msk.f32.mxu0 %vm2543_vm0, %v2544_v1  ;;  %v1109_v33 = vpop.permute.xlu1 %1108 }
 0x470   : > { %v1111_v34 = vpop.permute.xlu0 %1110 }
 0x535   : > { %v748_v20 = vpop.f32.mrb[2].mxu0 }
 0x536   : > { %v2094_v21 = vpop.f32.mrb[3].mxu0 }
 0x537   : > { %v1726_v21 = vsub.s32 0, %v1711_v9 }
 0x539   : > { %v824_v22 = vpop.f32.mrb[4].mxu0 }
 0x53a   : > { %v2099_v24 = vpop.f32.mrb[5].mxu0  ;;  %2100 = vmatprep.subr.msk.mxu1 %vm420_vm2, %v824_v22 }
 0x53b   : > { %2101 = vmatpush3.xpose.msk.msra.mxu1 %vm420_vm2, %v824_v22  ;;  %v1727_v22 = vrot.slane %v1694_v14, %v1726_v21 }
 0x53c   : > { %2108 = vmatprep.subr.msk.mxu1 %vm420_vm2, %v748_v20 }
 0x53d   : > { %v1100_v26 = vpop.f32.mrb[6].mxu0 }
 0x53e   : > { %2103 = vmatmul.mubr.msk.f32.vlgmr.msra.gmra.mrb[8].mxu1 %vm420_vm2, %v831_v23  ;;  %v2120_v27 = vpop.f32.mrb[7].mxu0 }
 0x53f   : > { %2109 = vmatpush3.xpose.msk.msra.mxu1 %vm420_vm2, %v748_v20  ;;  %2105 = vmatprep.mubr.msk.f32.mxu1 %vm420_vm2, %v833_v25 }
 0x540   : > { %2121 = vmatprep.subr.msk.mxu1 %vm420_vm2, %v1100_v26 }
 0x541   : > { %v1284_v29 = vpop.f32.mrb[8].mxu0 }
 0x542   : > { %2106 = vmatmul.mubr.msk.f32.gmra.mrb[10].mxu1 %vm420_vm2, %v835_v28  ;;  %v2133_v30 = vpop.f32.mrb[9].mxu0 }
 0x543   : > { %2110 = vmatprep.mubr.msk.f32.mxu1 %vm420_vm2, %v2837_v7  ;;  %v1289_v7 = vpop.permute.xlu1 %1288 }
 0x546   : > { %2111 = vmatmul.mubr.msk.f32.vlgmr.msra.gmra.mrb[8].mxu1 %vm420_vm2, %v2845_v10  ;;  %v1291_v10 = vpop.permute.xlu0 %1290 }
 0x547   : > { %2122 = vmatpush3.xpose.msk.msra.mxu1 %vm420_vm2, %v1100_v26  ;;  %2113 = vmatprep.mubr.msk.f32.mxu1 %vm420_vm2, %v2841_v8  ;;  %v1293_v8 = vpop.permute.xlu1 %1292 }
 0x548   : > { %2134 = vmatprep.subr.msk.mxu1 %vm420_vm2, %v1284_v29 }
 0x54a   : > { %2114 = vmatmul.mubr.msk.f32.gmra.mrb[10].mxu1 %vm420_vm2, %v2848_v11  ;;  %v1295_v35 = vpop.permute.xlu0 %1294  ;;  %v1397_v11 = vld [vmem:[#allocation7 + $0x8] sm:$0xff] }
 0x54b   : > { %2123 = vmatprep.mubr.msk.f32.mxu1 %vm420_vm2, %v1105_v31  ;;  %2143 = vmatpush3.msra.mxu0 %v1397_v11 }
 0x54c   : > { %2147 = vmatprep.subr.mxu0 %v2544_v1 }
 0x54e   : > { %2124 = vmatmul.mubr.msk.f32.vlgmr.msra.gmra.mrb[8].mxu1 %vm420_vm2, %v1107_v32 }
 0x54f   : > { %2135 = vmatpush3.xpose.msk.msra.mxu1 %vm420_vm2, %v1284_v29  ;;  %2126 = vmatprep.mubr.msk.f32.mxu1 %vm420_vm2, %v1109_v33 }
 0x552   : > { %2127 = vmatmul.mubr.msk.f32.gmra.mrb[10].mxu1 %vm420_vm2, %v1111_v34 }
 0x553   : > { %2136 = vmatprep.mubr.msk.f32.mxu1 %vm420_vm2, %v1289_v7 }
 0x556   : > { %2137 = vmatmul.mubr.msk.f32.vlgmr.msra.gmra.mrb[8].mxu1 %vm420_vm2, %v1291_v10  ;;  %v1817_v10 = vsub.s32 3, %v1711_v9 }
 0x557   : > { %2139 = vmatprep.mubr.msk.f32.mxu1 %vm420_vm2, %v1293_v8  ;;  %v1822_v8 = vsub.s32 4, %v1711_v9 }
 0x55a   : > { %2140 = vmatmul.mubr.msk.f32.gmra.mrb[10].mxu1 %vm420_vm2, %v1295_v35  ;;  %v1818_v35 = vrot.slane %v1694_v14, %v1817_v10 }
 0x629   : > { %v2138_v37 = vpop.f32.mrb[8].mxu1 }
 0x62a   : > { %v1373_v38 = vpop.f32.mrb[9].mxu1  ;;  %2145 = vmatmul.mubr.msk.f32.vlgmr.msra.gmra.mrb[10].mxu0 %vm420_vm2, %v2138_v37  ;;  %v1823_v37 = vrot.slane %v1694_v14, %v1822_v8 }
 0x62b   : > { %2148 = vmatpush3.msra.mxu0 %v1396_v36  ;;  %2149 = vmatprep.mubr.msk.f32.mxu0 %vm2543_vm0, %v2544_v1 }
 0x62c   : > { %2152 = vmatprep.subr.mxu0 %v2544_v1 }
 0x62d   : > { %v2141_v40 = vpop.f32.mrb[10].mxu1 }
 0x62e   : > { %v1383_v41 = vpop.f32.mrb[11].mxu1  ;;  %2150 = vmatmul.mubr.msk.f32.vlgmr.msra.gmra.mrb[12].mxu0 %vm420_vm2, %v1373_v38 }
 0x62f   : > { %2153 = vmatpush3.msra.mxu0 %v1398_v39  ;;  %2154 = vmatprep.mubr.msk.f32.mxu0 %vm2543_vm0, %v2544_v1 }
 0x630   : > { %2157 = vmatprep.subr.mxu0 %v2544_v1 }
 0x632   : > { %2155 = vmatmul.mubr.msk.f32.vlgmr.msra.gmra.mrb[14].mxu0 %vm420_vm2, %v1383_v41 }
 0x633   : > { %2158 = vmatpush3.msra.mxu0 %v1399_v42  ;;  %2159 = vmatprep.mubr.msk.f32.mxu0 %vm2543_vm0, %v2544_v1 }
 0x634   : > { %2179 = vmatprep.subr.bf16.mxu0 %v2542_v0 }
 0x636   : > { %2160 = vmatmul.mubr.msk.f32.vlgmr.msra.gmra.mrb[16].mxu0 %vm420_vm2, %v2141_v40 }
 0x637   : > { %2170 = vmatprep.mubr.msk.f32.mxu0 %vm2543_vm0, %v2544_v1  ;;  %2181 = vmatpush3.bf16.msra.mxu0 %v2180_v62 }
 0x638   : > { %2182 = vmatprep.subr.bf16.mxu0 %v2542_v0 }
 0x63b   : > { %2184 = vmatpush3.bf16.msra.mxu0 %v2183_v3 }
 0x6fd   : > { %v1469_v43 = vpop.f32.mrb[10].mxu0 }
 0x6fe   : > { %v2146_v44 = vpop.f32.mrb[11].mxu0 }
 0x701   : > { %v1542_v45 = vpop.f32.mrb[12].mxu0 }
 0x702   : > { %v1543_v46 = vadd.f32 %v1542_v45, %v1469_v43  ;;  %v2151_v47 = vpop.f32.mrb[13].mxu0 }
 0x705   : > { %v1615_v48 = vpop.f32.mrb[14].mxu0 }
 0x706   : > { %v1619_v49 = vadd.f32 %v1615_v48, %v1543_v46  ;;  %v2156_v50 = vpop.f32.mrb[15].mxu0 }
 0x709   : > { %v1689_v51 = vpop.f32.mrb[16].mxu0 }
 0x70a   : > { %v1693_v52 = vadd.f32 %v1689_v51, %v1619_v49  ;;  %v2161_v53 = vpop.f32.mrb[17].mxu0 }
 0x70c   : > { %v1695_v54 = vadd.f32 %v1693_v52, %v2852_v12 }
 0x70e   : > { %v1696_v55 = vsel %vm334_vm1, %v1695_v54, 0.0 }
 0x70f   : > { %1697 = vadd.xlane.f32.xlu1 %v1696_v55 }
 0x79c   : > { %v1698_v56 = vpop.xlane.xlu1 %1697 }
 0x79d   : > { %v1700_v57 = vmul.f32 0.03125, %v1698_v56 }
 0x79f   : > { %v1701_v58 = vsub.f32 %v1695_v54, %v1700_v57 }
 0x7a1   : > { %v1702_v1 = vmul.f32 %v1701_v58, %v1701_v58 }
 0x7a3   : > { %v1703_v59 = vsel %vm334_vm1, %v1702_v1, 0.0 }
 0x7a4   : > { %1704 = vadd.xlane.f32.xlu0 %v1703_v59 }
 0x831   : > { %v1705_v12 = vpop.xlane.xlu0 %1704 }
 0x832   : > { %v1706_v4 = vmul.f32 0.03125, %v1705_v12 }
 0x834   : > { %v1707_v6 = vadd.f32 1e-05, %v1706_v4 }
 0x836   : > { %2313 = vrsqrt.f32 %v1707_v6 }
 0x840   : > { %v2314_v17 = vpop.eup %2313 }
 0x841   : > { %v1709_v18 = vmul.f32 %v2314_v17, %v1701_v58 }
 0x843   : > { %v1714_v20 = vmul.f32 %v1713_v16, %v1709_v18 }
 0x845   : > { %v1719_v0 = vadd.f32 %v1718_v19, %v1714_v20 }
 0x847   : > { %2171 = vmatmul.mubr.msk.f32.vlgmr.msra.gmra.mrb[18].mxu0 %vm334_vm1, %v1719_v0 }
 0x91a   : > { %v1797_v23 = vpop.f32.mrb[18].mxu0 }
 0x91b   : > { %v1798_v24 = vadd.f32 %v1797_v23, %v1727_v22  ;;  %v2172_v25 = vpop.f32.mrb[19].mxu0 }
 0x91d   : > { %v1801_v26 = vadd.f32 %v1798_v24, %v1719_v0 }
 0x91f   : > { %v1802_v27 = vsel %vm334_vm1, %v1801_v26, 0.0 }
 0x920   : > { %1803 = vadd.xlane.f32.xlu0 %v1802_v27 }
 0x9ad   : > { %v1804_v28 = vpop.xlane.xlu0 %1803 }
 0x9ae   : > { %v1805_v29 = vmul.f32 0.03125, %v1804_v28 }
 0x9b0   : > { %v1806_v30 = vsub.f32 %v1801_v26, %v1805_v29 }
 0x9b2   : > { %v1807_v31 = vmul.f32 %v1806_v30, %v1806_v30 }
 0x9b4   : > { %v1808_v32 = vsel %vm334_vm1, %v1807_v31, 0.0 }
 0x9b5   : > { %1809 = vadd.xlane.f32.xlu1 %v1808_v32 }
 0xa42   : > { %v1810_v33 = vpop.xlane.xlu1 %1809 }
 0xa43   : > { %v1811_v34 = vmul.f32 0.03125, %v1810_v33 }
 0xa45   : > { %v1812_v7 = vadd.f32 1e-05, %v1811_v34 }
 0xa47   : > { %2315 = vrsqrt.f32 %v1812_v7 }
 0xa51   : > { %v2316_v11 = vpop.eup %2315 }
 0xa52   : > { %v1814_v36 = vmul.f32 %v2316_v11, %v1806_v30 }
 0xa54   : > { %v1819_v38 = vmul.f32 %v1818_v35, %v1814_v36 }
 0xa56   : > { %v1824_v39 = vadd.f32 %v1823_v37, %v1819_v38 }
 0xa58   : > { %1825 = vst.msk [vmem:[%s324_s8] sm:$0xff] %vm334_vm1, %v1824_v39 }
 0xa59   : > { %2472 = shalt.err (!%p2469_p0)
}
 0xa5a   : > { %s2473_s14 = scalar_lea.hbm %s2981_s12, 128  ;;  %s2477_s11 = scalar_lea.hbm %s3031_s6, 512 }
 0xa5b   : > { %p2474_p2 = scmp.ne.s32.totalorder %s2981_s12, %s2473_s14  ;;  %p2478_p10 = scmp.lt.u32.totalorder %s2981_s12, %s3031_s6 }
 0xa5c   : > { %p2479_p11 = scmp.lt.u32.totalorder %s2477_s11, %s2473_s14  ;;  %p2481_p5 = scmp.lt.u32.totalorder %s2473_s14, %s2981_s12 }
 0xa5d   : > { %p2475_p7 = pnand %p2474_p2, %p3049_p4 }
 0xa5e   : > { %p2480_p1 = por %p2479_p11, %p2478_p10 }
 0xa5f   : > { %p2476_p9 = pneg %p2475_p7 }
 0xa60   : > { %p2482_p6 = por %p2481_p5, %p2480_p1 }
 0xa62   : > { %p2483_p8 = pnand %p2482_p6, %p2476_p9 }
 0xa64   : > { %2486 = shalt.err (!%p2483_p8)
}
 0xa65   : > { %2215 = dma.vmem_to_hbm [thread:$0]  (%p3049_p4), %s2983_s18, 128, %s2981_s12, %s1827_s13  }
 0xa66 PF: > { %p2247_p12 = scmp.ge.s32.totalorder %s2533_s24, 2  ;;  %s1852_s8 = sand.u32 1, %s2521_s21  }
 0xa67   : > { %p3050_p3 = scmp.ne.s32.totalorder %s3042_s25, 0  ;;  %s1853_s28 = scalar_lea.sflag [#allocation4], %s1852_s8 }
 0xa69   : > { %p2235_p13 = pnand %p2247_p12, %p3050_p3 }
 0xa6b   : > { %2516 = dma.done.wait (!%p2235_p13), %s1853_s28, 128  }
 0xa6c   : > { %2518 = vsyncadd (!%p2235_p13), %s1853_s28, 4294967168  ;;  %p21_p0 = scmp.ge.s32.totalorder %s2740_s15, 6   ;;  %s3051_s21 = smov %s2525_s22 }
 0xa6d   : > { %s3052_s22 = smov %s2529_s23  ;;  %s3053_s23 = smov %s2751_s26 }
 0xa6e   : > { %s3054_s24 = smov %s2740_s15  ;;  %23 = sbr.rel (!%p21_p0) target bundleno = 7 (0x7), region = 105 }
 0xa75   :  { %1858 = vsyncpa [#allocation3], 1 }
 0xa76   :  { %1860 = vsyncpa [#allocation3 + $0x1], 1 }
 0xa77   :  { %1861 = vsyncpa [#allocation6], 1 }
 0xa78   :  { %1862 = vsyncpa [#allocation9], 1 }
 0xa79   :  { %1863 = vsyncpa [#allocation4], 1 }
 0xa7a   :  { %1865 = vsyncpa [#allocation4 + $0x1], 1 }

</bundles_post_ra>
